<compile_context>
chip_gen: v6e
topology: v6e:2x2x1
jax: 0.10.0
libtpu: 0.0.40
codegen_flags: <defaults>
</compile_context>

<pallas_src>
import functools

import jax
import jax.numpy as jnp
from jax.experimental import pallas as pl
from jax.experimental.pallas import tpu as pltpu


def _round_up(x, m):
    return ((x + m - 1) // m) * m


# ----------------------------- Pallas kernel ---------------------------------
def _fused_conv_block_kernel(x_ref, w1_ref, b1_ref, w2_ref, b2_ref, o_ref, y_scr,
                             *, K, stride, pad2, L1, mxu_dtype):
    """One (batch element, L2-tile) grid step.

    x_ref : (Lp, Cin)      time-major, zero-halo-padded input (whole padded seq, one batch elem)
    w1_ref: (K, Cin, C1p)  conv1 weights, one (Cin, C1p) MXU matrix per tap (C1 padded to C1p)
    b1_ref: (1, C1p)       conv1 bias (f32)
    w2_ref: (K, C1p, C1p)  conv2 weights
    b2_ref: (1, C1p)       conv2 bias (f32)
    o_ref : (C1, TL2)      NCL output tile
    y_scr : (TLY, C1p)     f32 VMEM scratch: relu(conv1) intermediate for this tile's window
    """
    C1, TL2 = o_ref.shape
    TLY, C1p = y_scr.shape
    t = pl.program_id(1)
    step = stride * TL2

    x0 = t * step                                   # padded-x row of this tile's first conv1 read
    if step % 128 == 0:
        x0 = pl.multiple_of(x0, 128)
    elif step % 8 == 0:
        x0 = pl.multiple_of(x0, 8)

    # ---- conv1 + bias + ReLU (stride 1) over this tile's window: K static taps -> K MXU matmuls
    acc1 = jnp.zeros((TLY, C1p), jnp.float32)
    for k in range(K):                              # K small & static -> unrolled
        xk = x_ref[pl.ds(x0 + k, TLY), :]
        acc1 += jnp.dot(xk.astype(mxu_dtype), w1_ref[k],
                        preferred_element_type=jnp.float32)
    y = jnp.maximum(acc1 + b1_ref[...], 0.0)
    # conv2's zero padding of the intermediate: zero rows whose global conv1 index is out of range
    y0 = t * step - pad2                            # global conv1-output index of local row 0
    rows = jax.lax.broadcasted_iota(jnp.int32, (TLY, C1p), 0) + y0
    y = jnp.where((rows >= 0) & (rows < L1), y, 0.0)
    # dropout: identity at inference  # TODO(synk): training dropout via pltpu.prng_* mask
    y_scr[...] = y

    # ---- conv2 with in-kernel stride: static sublane-strided reads of the f32 scratch ----
    acc2 = jnp.zeros((TL2, C1p), jnp.float32)
    for k in range(K):
        if stride == 1:
            r = y_scr[pl.ds(k, TL2), :]
        else:
            r = y_scr[pl.ds(k, TL2, stride=stride), :]
        acc2 += jnp.dot(r.astype(mxu_dtype), w2_ref[k],
                        preferred_element_type=jnp.float32)
    acc2 = acc2 + b2_ref[...]
    # lane-dense (C1p, TL2) transpose, then drop the padded channels for the NCL store.
    o_ref[...] = jnp.transpose(acc2)[:C1, :].astype(o_ref.dtype)


# ------------------------------- wrapper --------------------------------------
def _vmem_bytes_estimate(*, Lp, Cin, C1, C1p, TL2, TLY, K, x_bytes, mxu_bytes, out_bytes):
    f32 = 4
    return int(
        2 * Lp * Cin * x_bytes                        # x block (double-buffered)
        + 2 * K * (Cin + C1p) * C1p * mxu_bytes       # w1 + w2 blocks
        + 2 * 2 * C1p * f32                           # biases
        + 2 * C1 * TL2 * out_bytes                    # output blocks
        + TLY * C1p * f32                             # y_scr
        + TLY * C1p * (f32 + mxu_bytes)               # acc1 + per-tap cast temp
        + TL2 * C1p * (2 * f32 + mxu_bytes))          # acc2 + transpose temp + cast temp


def fused_conv_block(x_ncl, w1, b1, w2, b2, *, stride, padding, conv1_padding=1,
                     mxu_dtype=jnp.float32, max_tile_l2=512):
    """ConvolutionBlock forward (inference) for Conv1d / output_size=None.

    x_ncl: (B, Cin, L)  w1: (C1, Cin, K)  b1: (C1,)  w2: (C1, C1, K)  b2: (C1,)
    returns (B, C1, L2), L2 = ((L + 2*conv1_padding - K + 1) + 2*padding - K)//stride + 1
    """
    B, Cin, L = x_ncl.shape
    C1, _, K = w1.shape
    pad1, pad2, S = conv1_padding, padding, stride
    L1 = L + 2 * pad1 - K + 1
    L2 = (L1 + 2 * pad2 - K) // S + 1
    assert L1 >= 1 and L2 >= 1

    # Generation-aware VMEM budget (128 MiB v5e/v6e, 64 MiB v7x) with headroom.
    try:
        vmem_cap = int(pltpu.get_tpu_info().vmem_capacity_bytes)
    except Exception:
        vmem_cap = 64 * 1024 * 1024

    C1p = _round_up(C1, 128)                          # lane-dense accumulators / intermediate
    x_bytes = jnp.dtype(x_ncl.dtype).itemsize
    mxu_bytes = jnp.dtype(mxu_dtype).itemsize

    def est(tl2):
        n_t_ = pl.cdiv(L2, tl2)
        tly_ = S * tl2 + K - S                        # conv1 rows needed per output tile
        lp_ = _round_up(max(pad1 + pad2 + L, S * n_t_ * tl2 + 2 * K - S - 1), 8)
        e = _vmem_bytes_estimate(Lp=lp_, Cin=Cin, C1=C1, C1p=C1p, TL2=tl2, TLY=tly_, K=K,
                                 x_bytes=x_bytes, mxu_bytes=mxu_bytes, out_bytes=x_bytes)
        return e, lp_, tly_, n_t_

    # --- choose the L2 tile: whole L2 when small, else the largest 128-multiple that fits ---
    if L2 <= max_tile_l2:
        TL2 = L2
    else:
        start = max(128, (min(max_tile_l2, 1024) // 128) * 128)
        TL2 = 128
        for cand in range(start, 127, -128):
            if est(cand)[0] <= int(0.45 * vmem_cap):
                TL2 = cand
                break
    vmem_est, Lp, TLY, n_t = est(TL2)
    vmem_limit = int(min(0.85 * vmem_cap, max(1.5 * vmem_est, 32 * 1024 * 1024)))

    # --- HBM-side prep: one small XLA transpose+pad of x (time-major, zero halos), and ---
    # --- channel-padded / per-tap-reordered weights (tiny HBM copies).                  ---
    PADL = pad1 + pad2
    PADR = Lp - (PADL + L)
    x_tp = jnp.transpose(x_ncl, (0, 2, 1))                       # (B, L, Cin)
    x_tp = jnp.pad(x_tp, ((0, 0), (PADL, PADR), (0, 0)))         # (B, Lp, Cin)

    w1_kio = jnp.transpose(w1, (2, 1, 0)).astype(mxu_dtype)      # (K, Cin, C1)
    w2_kio = jnp.transpose(w2, (2, 1, 0)).astype(mxu_dtype)      # (K, C1, C1)
    if C1p != C1:
        w1_kio = jnp.pad(w1_kio, ((0, 0), (0, 0), (0, C1p - C1)))
        w2_kio = jnp.pad(w2_kio, ((0, 0), (0, C1p - C1), (0, C1p - C1)))
    b1_2d = jnp.pad(b1.astype(jnp.float32), (0, C1p - C1)).reshape(1, C1p)
    b2_2d = jnp.pad(b2.astype(jnp.float32), (0, C1p - C1)).reshape(1, C1p)

    kernel = functools.partial(_fused_conv_block_kernel, K=K, stride=S, pad2=pad2,
                               L1=L1, mxu_dtype=mxu_dtype)
    return pl.pallas_call(
        kernel,
        out_shape=jax.ShapeDtypeStruct((B, C1, L2), x_ncl.dtype),
        grid=(B, n_t),
        in_specs=[
            pl.BlockSpec((None, Lp, Cin), lambda b, t: (b, 0, 0)),   # x: resident per batch elem
            pl.BlockSpec((K, Cin, C1p), lambda b, t: (0, 0, 0)),     # w1: resident across grid
            pl.BlockSpec((1, C1p), lambda b, t: (0, 0)),             # b1
            pl.BlockSpec((K, C1p, C1p), lambda b, t: (0, 0, 0)),     # w2
            pl.BlockSpec((1, C1p), lambda b, t: (0, 0)),             # b2
        ],
        out_specs=pl.BlockSpec((None, C1, TL2), lambda b, t: (b, 0, t)),
        scratch_shapes=[pltpu.VMEM((TLY, C1p), jnp.float32)],        # tile-sized intermediate
        compiler_params=pltpu.CompilerParams(
            dimension_semantics=("parallel", "parallel"),
            vmem_limit_bytes=vmem_limit,
        ),
    )(x_tp, w1_kio, b1_2d, w2_kio, b2_2d)


# --------------------------- ConvolutionBlock ---------------------------------
class ConvolutionBlockPallas:
    """Pallas port of ConvolutionBlock (conv_type=nn.Conv1d, output_size=None), inference."""

    def __init__(self, in_channels, out_channels, kernel_size, stride, padding,
                 dropout, output_size, key, mxu_dtype=jnp.float32):
        del dropout  # identity at inference  # TODO(synk): training-mode dropout not implemented
        self.stride = stride
        self.padding = padding
        # TODO(synk): output_size != None (ConvTranspose1d) branch not implemented
        self.output_size = output_size
        self.mxu_dtype = mxu_dtype
        k1, k2 = jax.random.split(key)
        # kaiming_normal_ (fan_in, gain=sqrt(2)) weights, zero bias -- matches PyTorch init
        fan1 = in_channels * kernel_size
        self.w1 = ((2.0 / fan1) ** 0.5) * jax.random.normal(
            k1, (out_channels, in_channels, kernel_size), jnp.float32)
        self.b1 = jnp.zeros((out_channels,), jnp.float32)
        fan2 = out_channels * kernel_size
        self.w2 = ((2.0 / fan2) ** 0.5) * jax.random.normal(
            k2, (out_channels, out_channels, kernel_size), jnp.float32)
        self.b2 = jnp.zeros((out_channels,), jnp.float32)

    def __call__(self, x_ncl):
        # NCL in, NCL out (PyTorch Conv1d convention).
        return fused_conv_block(x_ncl, self.w1, self.b1, self.w2, self.b2,
                                stride=self.stride, padding=self.padding,
                                mxu_dtype=self.mxu_dtype)


# ------------------------------ reference -------------------------------------
def _reference(block, x_ncl):
    dn = jax.lax.conv_dimension_numbers(x_ncl.shape, block.w1.shape, ("NCH", "OIH", "NCH"))
    y = jax.lax.conv_general_dilated(x_ncl, block.w1, (1,), [(1, 1)], dimension_numbers=dn)
    y = jnp.maximum(y + block.b1[None, :, None], 0.0)
    y = jax.lax.conv_general_dilated(y, block.w2, (block.stride,),
                                     [(block.padding, block.padding)], dimension_numbers=dn)
    return y + block.b2[None, :, None]


if __name__ == "__main__":
    key = jax.random.PRNGKey(0)
    k_param, k_x, k_x2 = jax.random.split(key, 3)

    B, C_IN, C_OUT, L = 2, 8, 16, 16
    K, STRIDE, PAD = 3, 2, 1

    block = ConvolutionBlockPallas(in_channels=C_IN, out_channels=C_OUT, kernel_size=K,
                                   stride=STRIDE, padding=PAD, dropout=0.1,
                                   output_size=None, key=k_param)
    x = jax.random.normal(k_x, (B, C_IN, L), jnp.float32)  # NCL, like PyTorch Conv1d

    # --- single-tile path ---
    out = jax.block_until_ready(block(x))
    ref = _reference(block, x)
    L2 = ((L + 2 - K + 1) + 2 * PAD - K) // STRIDE + 1
    assert out.shape == ref.shape == (B, C_OUT, L2), (out.shape, ref.shape)
    assert jnp.allclose(out, ref, atol=5e-4, rtol=5e-4), float(jnp.max(jnp.abs(out - ref)))

    # --- L-tiled path (grid=(B, n_t), partial last tile) at a still-small length ---
    L_LONG = 400
    x_long = jax.random.normal(k_x2, (B, C_IN, L_LONG), jnp.float32)
    out_t = jax.block_until_ready(
        fused_conv_block(x_long, block.w1, block.b1, block.w2, block.b2,
                         stride=STRIDE, padding=PAD, max_tile_l2=128))
    ref_t = _reference(block, x_long)
    assert out_t.shape == ref_t.shape
    assert jnp.allclose(out_t, ref_t, atol=5e-4, rtol=5e-4), float(jnp.max(jnp.abs(out_t - ref_t)))

    # --- bf16 MXU operands (f32 accumulation) -- recommended on v5e / v6e / v7x alike ---
    out_bf16 = jax.block_until_ready(
        fused_conv_block(x, block.w1, block.b1, block.w2, block.b2,
                         stride=STRIDE, padding=PAD, mxu_dtype=jnp.bfloat16))
    assert out_bf16.shape == ref.shape
    assert jnp.allclose(out_bf16, ref, atol=1e-1, rtol=1e-1)

    print("KERNEL_OK")
</pallas_src>

<mosaic_0001>
module attributes {stable_mosaic.version = 11 : i64} {
  func.func @_fused_conv_block_kernel(%arg0: i32, %arg1: i32, %arg2: memref<1x24x8xf32, #tpu.memory_space<vmem>>, %arg3: memref<3x8x128xf32, #tpu.memory_space<vmem>>, %arg4: memref<1x128xf32, #tpu.memory_space<vmem>>, %arg5: memref<3x128x128xf32, #tpu.memory_space<vmem>>, %arg6: memref<1x128xf32, #tpu.memory_space<vmem>>, %arg7: memref<1x16x8xf32, #tpu.memory_space<vmem>>, %arg8: memref<17x128xf32, #tpu.memory_space<vmem>>) attributes {dimension_semantics = [#tpu.dimension_semantics<parallel>, #tpu.dimension_semantics<parallel>], iteration_bounds = array<i64: 2, 1>, scalar_prefetch = 0 : i64, scratch_operands = 1 : i64, tpu.core_type = #tpu.core_type<tc>, window_params = [{transform_indices = @transform_0, window_bounds = array<i64: 1, 24, 8>}, {pipeline_mode = #tpu.pipeline_mode<synchronous>, transform_indices = @transform_1, window_bounds = array<i64: 3, 8, 128>}, {pipeline_mode = #tpu.pipeline_mode<synchronous>, transform_indices = @transform_2, window_bounds = array<i64: 1, 128>}, {pipeline_mode = #tpu.pipeline_mode<synchronous>, transform_indices = @transform_3, window_bounds = array<i64: 3, 128, 128>}, {pipeline_mode = #tpu.pipeline_mode<synchronous>, transform_indices = @transform_4, window_bounds = array<i64: 1, 128>}, {transform_indices = @transform_5, window_bounds = array<i64: 1, 16, 8>}]} {
    %c16_i32 = arith.constant 16 : i32
    %0 = arith.muli %arg1, %c16_i32 : i32
    %1 = tpu.assume_multiple %0, 8 : i32
    %cst = arith.constant 0.000000e+00 : f32
    %2 = vector.broadcast %cst : f32 to vector<17x128xf32>
    %c0_i32 = arith.constant 0 : i32
    %3 = arith.addi %1, %c0_i32 : i32
    %c0 = arith.constant 0 : index
    %4 = arith.index_cast %3 : i32 to index
    %c0_0 = arith.constant 0 : index
    %5 = vector.load %arg2[%c0, %4, %c0_0] : memref<1x24x8xf32, #tpu.memory_space<vmem>>, vector<1x17x8xf32>
    %6 = vector.shape_cast %5 : vector<1x17x8xf32> to vector<17x8xf32>
    %c0_1 = arith.constant 0 : index
    %c0_2 = arith.constant 0 : index
    %c0_3 = arith.constant 0 : index
    %7 = vector.load %arg3[%c0_1, %c0_2, %c0_3] : memref<3x8x128xf32, #tpu.memory_space<vmem>>, vector<1x8x128xf32>
    %8 = vector.shape_cast %7 : vector<1x8x128xf32> to vector<8x128xf32>
    %cst_4 = arith.constant dense<0.000000e+00> : vector<17x128xf32>
    %9 = tpu.matmul %6, %8, %cst_4 {dimension_numbers = #tpu.dot_dimension_numbers<[1], [0], [0], [1], [0, 0, 1, 1], [], []>} : vector<17x8xf32>, vector<8x128xf32>, vector<17x128xf32> -> vector<17x128xf32>
    %10 = arith.addf %2, %9 : vector<17x128xf32>
    %c1_i32 = arith.constant 1 : i32
    %11 = arith.addi %1, %c1_i32 : i32
    %c0_5 = arith.constant 0 : index
    %12 = arith.index_cast %11 : i32 to index
    %c0_6 = arith.constant 0 : index
    %13 = vector.load %arg2[%c0_5, %12, %c0_6] : memref<1x24x8xf32, #tpu.memory_space<vmem>>, vector<1x17x8xf32>
    %14 = vector.shape_cast %13 : vector<1x17x8xf32> to vector<17x8xf32>
    %c1 = arith.constant 1 : index
    %c0_7 = arith.constant 0 : index
    %c0_8 = arith.constant 0 : index
    %15 = vector.load %arg3[%c1, %c0_7, %c0_8] : memref<3x8x128xf32, #tpu.memory_space<vmem>>, vector<1x8x128xf32>
    %16 = vector.shape_cast %15 : vector<1x8x128xf32> to vector<8x128xf32>
    %cst_9 = arith.constant dense<0.000000e+00> : vector<17x128xf32>
    %17 = tpu.matmul %14, %16, %cst_9 {dimension_numbers = #tpu.dot_dimension_numbers<[1], [0], [0], [1], [0, 0, 1, 1], [], []>} : vector<17x8xf32>, vector<8x128xf32>, vector<17x128xf32> -> vector<17x128xf32>
    %18 = arith.addf %10, %17 : vector<17x128xf32>
    %c2_i32 = arith.constant 2 : i32
    %19 = arith.addi %1, %c2_i32 : i32
    %c0_10 = arith.constant 0 : index
    %20 = arith.index_cast %19 : i32 to index
    %c0_11 = arith.constant 0 : index
    %21 = vector.load %arg2[%c0_10, %20, %c0_11] : memref<1x24x8xf32, #tpu.memory_space<vmem>>, vector<1x17x8xf32>
    %22 = vector.shape_cast %21 : vector<1x17x8xf32> to vector<17x8xf32>
    %c2 = arith.constant 2 : index
    %c0_12 = arith.constant 0 : index
    %c0_13 = arith.constant 0 : index
    %23 = vector.load %arg3[%c2, %c0_12, %c0_13] : memref<3x8x128xf32, #tpu.memory_space<vmem>>, vector<1x8x128xf32>
    %24 = vector.shape_cast %23 : vector<1x8x128xf32> to vector<8x128xf32>
    %cst_14 = arith.constant dense<0.000000e+00> : vector<17x128xf32>
    %25 = tpu.matmul %22, %24, %cst_14 {dimension_numbers = #tpu.dot_dimension_numbers<[1], [0], [0], [1], [0, 0, 1, 1], [], []>} : vector<17x8xf32>, vector<8x128xf32>, vector<17x128xf32> -> vector<17x128xf32>
    %26 = arith.addf %18, %25 : vector<17x128xf32>
    %c0_15 = arith.constant 0 : index
    %c0_16 = arith.constant 0 : index
    %27 = vector.load %arg4[%c0_15, %c0_16] : memref<1x128xf32, #tpu.memory_space<vmem>>, vector<1x128xf32>
    %28 = vector.broadcast %27 : vector<1x128xf32> to vector<17x128xf32>
    %29 = arith.addf %26, %28 : vector<17x128xf32>
    %cst_17 = arith.constant 0.000000e+00 : f32
    %30 = vector.broadcast %cst_17 : f32 to vector<17x128xf32>
    %31 = arith.maximumf %29, %30 : vector<17x128xf32>
    %c16_i32_18 = arith.constant 16 : i32
    %32 = arith.muli %arg1, %c16_i32_18 : i32
    %c1_i32_19 = arith.constant 1 : i32
    %33 = arith.subi %32, %c1_i32_19 : i32
    %34 = tpu.iota {dimensions = array<i32: 0>} : vector<17x128xi32>
    %35 = vector.broadcast %33 : i32 to vector<17x128xi32>
    %36 = arith.addi %34, %35 : vector<17x128xi32>
    %c0_i32_20 = arith.constant 0 : i32
    %37 = vector.broadcast %c0_i32_20 : i32 to vector<17x128xi32>
    %38 = arith.cmpi sge, %36, %37 : vector<17x128xi32>
    %c16_i32_21 = arith.constant 16 : i32
    %39 = vector.broadcast %c16_i32_21 : i32 to vector<17x128xi32>
    %40 = arith.cmpi slt, %36, %39 : vector<17x128xi32>
    %41 = arith.andi %38, %40 : vector<17x128xi1>
    %cst_22 = arith.constant 0.000000e+00 : f32
    %42 = vector.broadcast %cst_22 : f32 to vector<17x128xf32>
    %43 = arith.select %41, %31, %42 : vector<17x128xi1>, vector<17x128xf32>
    %c0_23 = arith.constant 0 : index
    %c0_24 = arith.constant 0 : index
    %44 = vector.load %arg8[%c0_23, %c0_24] : memref<17x128xf32, #tpu.memory_space<vmem>>, vector<17x128xf32>
    tpu.vector_store %arg8[%c0_23, %c0_24], %43 {strides = array<i32>} : memref<17x128xf32, #tpu.memory_space<vmem>>, vector<17x128xf32>,
    %cst_25 = arith.constant 0.000000e+00 : f32
    %45 = vector.broadcast %cst_25 : f32 to vector<8x128xf32>
    %c0_26 = arith.constant 0 : index
    %c0_27 = arith.constant 0 : index
    %46 = tpu.strided_load %arg8[%c0_26, %c0_27] {strides = array<i32: 2, 1>} : memref<17x128xf32, #tpu.memory_space<vmem>>, vector<8x128xf32>
    %c0_28 = arith.constant 0 : index
    %c0_29 = arith.constant 0 : index
    %c0_30 = arith.constant 0 : index
    %47 = vector.load %arg5[%c0_28, %c0_29, %c0_30] : memref<3x128x128xf32, #tpu.memory_space<vmem>>, vector<1x128x128xf32>
    %48 = vector.shape_cast %47 : vector<1x128x128xf32> to vector<128x128xf32>
    %cst_31 = arith.constant dense<0.000000e+00> : vector<8x128xf32>
    %49 = tpu.matmul %46, %48, %cst_31 {dimension_numbers = #tpu.dot_dimension_numbers<[1], [0], [0], [1], [0, 0, 1, 1], [], []>} : vector<8x128xf32>, vector<128x128xf32>, vector<8x128xf32> -> vector<8x128xf32>
    %50 = arith.addf %45, %49 : vector<8x128xf32>
    %c1_32 = arith.constant 1 : index
    %c0_33 = arith.constant 0 : index
    %51 = tpu.strided_load %arg8[%c1_32, %c0_33] {strides = array<i32: 2, 1>} : memref<17x128xf32, #tpu.memory_space<vmem>>, vector<8x128xf32>
    %c1_34 = arith.constant 1 : index
    %c0_35 = arith.constant 0 : index
    %c0_36 = arith.constant 0 : index
    %52 = vector.load %arg5[%c1_34, %c0_35, %c0_36] : memref<3x128x128xf32, #tpu.memory_space<vmem>>, vector<1x128x128xf32>
    %53 = vector.shape_cast %52 : vector<1x128x128xf32> to vector<128x128xf32>
    %cst_37 = arith.constant dense<0.000000e+00> : vector<8x128xf32>
    %54 = tpu.matmul %51, %53, %cst_37 {dimension_numbers = #tpu.dot_dimension_numbers<[1], [0], [0], [1], [0, 0, 1, 1], [], []>} : vector<8x128xf32>, vector<128x128xf32>, vector<8x128xf32> -> vector<8x128xf32>
    %55 = arith.addf %50, %54 : vector<8x128xf32>
    %c2_38 = arith.constant 2 : index
    %c0_39 = arith.constant 0 : index
    %56 = tpu.strided_load %arg8[%c2_38, %c0_39] {strides = array<i32: 2, 1>} : memref<17x128xf32, #tpu.memory_space<vmem>>, vector<8x128xf32>
    %c2_40 = arith.constant 2 : index
    %c0_41 = arith.constant 0 : index
    %c0_42 = arith.constant 0 : index
    %57 = vector.load %arg5[%c2_40, %c0_41, %c0_42] : memref<3x128x128xf32, #tpu.memory_space<vmem>>, vector<1x128x128xf32>
    %58 = vector.shape_cast %57 : vector<1x128x128xf32> to vector<128x128xf32>
    %cst_43 = arith.constant dense<0.000000e+00> : vector<8x128xf32>
    %59 = tpu.matmul %56, %58, %cst_43 {dimension_numbers = #tpu.dot_dimension_numbers<[1], [0], [0], [1], [0, 0, 1, 1], [], []>} : vector<8x128xf32>, vector<128x128xf32>, vector<8x128xf32> -> vector<8x128xf32>
    %60 = arith.addf %55, %59 : vector<8x128xf32>
    %c0_44 = arith.constant 0 : index
    %c0_45 = arith.constant 0 : index
    %61 = vector.load %arg6[%c0_44, %c0_45] : memref<1x128xf32, #tpu.memory_space<vmem>>, vector<1x128xf32>
    %62 = vector.broadcast %61 : vector<1x128xf32> to vector<8x128xf32>
    %63 = arith.addf %60, %62 : vector<8x128xf32>
    %64 = tpu.transpose %63, [1, 0] : vector<8x128xf32> -> vector<128x8xf32>
    %65 = vector.extract_strided_slice %64 {offsets = [0, 0], sizes = [16, 8], strides = [1, 1]} : vector<128x8xf32> to vector<16x8xf32>
    %c0_46 = arith.constant 0 : index
    %c0_47 = arith.constant 0 : index
    %c0_48 = arith.constant 0 : index
    %66 = vector.load %arg7[%c0_46, %c0_47, %c0_48] : memref<1x16x8xf32, #tpu.memory_space<vmem>>, vector<1x16x8xf32>
    %67 = vector.shape_cast %66 : vector<1x16x8xf32> to vector<16x8xf32>
    %68 = vector.shape_cast %65 : vector<16x8xf32> to vector<1x16x8xf32>
    tpu.vector_store %arg7[%c0_46, %c0_47, %c0_48], %68 {strides = array<i32>} : memref<1x16x8xf32, #tpu.memory_space<vmem>>, vector<1x16x8xf32>,
    return
  }
  func.func @transform_0(%arg0: i32, %arg1: i32) -> (i32, i32, i32) {
    %c0_i32 = arith.constant 0 : i32
    %c0_i32_0 = arith.constant 0 : i32
    %c0_i32_1 = arith.constant 0 : i32
    return %arg0, %c0_i32, %c0_i32_0 : i32, i32, i32
  }
  func.func @transform_1(%arg0: i32, %arg1: i32) -> (i32, i32, i32) {
    %c0_i32 = arith.constant 0 : i32
    %c0_i32_0 = arith.constant 0 : i32
    %c0_i32_1 = arith.constant 0 : i32
    %c0_i32_2 = arith.constant 0 : i32
    return %c0_i32, %c0_i32_0, %c0_i32_1 : i32, i32, i32
  }
  func.func @transform_2(%arg0: i32, %arg1: i32) -> (i32, i32) {
    %c0_i32 = arith.constant 0 : i32
    %c0_i32_0 = arith.constant 0 : i32
    %c0_i32_1 = arith.constant 0 : i32
    return %c0_i32, %c0_i32_0 : i32, i32
  }
  func.func @transform_3(%arg0: i32, %arg1: i32) -> (i32, i32, i32) {
    %c0_i32 = arith.constant 0 : i32
    %c0_i32_0 = arith.constant 0 : i32
    %c0_i32_1 = arith.constant 0 : i32
    %c0_i32_2 = arith.constant 0 : i32
    return %c0_i32, %c0_i32_0, %c0_i32_1 : i32, i32, i32
  }
  func.func @transform_4(%arg0: i32, %arg1: i32) -> (i32, i32) {
    %c0_i32 = arith.constant 0 : i32
    %c0_i32_0 = arith.constant 0 : i32
    %c0_i32_1 = arith.constant 0 : i32
    return %c0_i32, %c0_i32_0 : i32, i32
  }
  func.func @transform_5(%arg0: i32, %arg1: i32) -> (i32, i32, i32) {
    %c0_i32 = arith.constant 0 : i32
    %c0_i32_0 = arith.constant 0 : i32
    return %arg0, %c0_i32, %arg1 : i32, i32, i32
  }
}

</mosaic_0001>

<bundles_post_ra>
// kernel: tpu_custom_call.1
= control target key start
LH: loop header
LB: loop body
LE: loop exit
PB: predicated region body
PF: predicated region fallthrough
CT: control target
= control target key end

     0   :  { %10 = vsyncpa [#allocation4], 0  ;;  %s1356_s18 = smov 0   ;;  %s1358_s19 = smov 0   ;;  %s1531_s0 = inlined_call_operand.vmem [shape: f32[2,24,8], index: 0, kind: input, shape index: {}]   ;;  %s1532_s1 = inlined_call_operand.vmem [shape: f32[3,8,128], index: 1, kind: input, shape index: {}]   ;;  %s1533_s2 = inlined_call_operand.vmem [shape: f32[1,128], index: 2, kind: input, shape index: {}]   ;;  %s1534_s3 = inlined_call_operand.hbm [shape: f32[3,128,128], index: 3, kind: input, shape index: {}]   ;;  %s1535_s4 = inlined_call_operand.vmem [shape: f32[1,128], index: 4, kind: input, shape index: {}]   ;;  %s1536_s5 = inlined_call_operand.vmem [shape: f32[2,16,8], index: 5, kind: output, shape index: {}]  }
   0x1   :  { %s1360_s20 = smov 0  }
   0x2 LB: > { %s994_s21 = sadd.s32 4294967295, %s1319_s20   ;;  %s28_s22 = sadd.s32 1, %s1315_s19  ;;  %s1319_s20 = sphi %s1360_s20, %s16_s20   ;;  %s1315_s19 = sphi %s1358_s19, %s1540_s19   ;;  %s1311_s18 = sphi %s1356_s18, %s1539_s18  }
   0x3   : > { %p30_p0 = scmp.ge.s32.totalorder %s28_s22, 2  ;;  %p996_p1 = scmp.ge.s32.totalorder %s1319_s20, 1 }
   0x4   : > { %p171_p2 = scmp.lt.s32.totalorder %s1319_s20, 3  ;;  %p1381_p4 = scmp.eq.s32.totalorder %s994_s21, 0 }
   0x5   : > { %s1542_s22 = smov (%p30_p0, %s28_s22), 0  ;;  %s1321_s25 = smov [#allocation3]  }
   0x6   : > { %p1377_p3 = pnand %p996_p1, %p171_p2  ;;  %s189_s26 = sshll.u32 %s1321_s25, 4  ;;  %s190_s26 = int_to_ptr.vmem [resolvable:$true] %s189_s26 }
   0x7   : > { %s1278_s27 = scalar_lea.vmem %s190_s26, 6144  ;;  %p1286_p11 = scmp.lt.s32.totalorder %s190_s26, %s190_s26 }
   0x8   : > { %p1232_p5 = pneg %p1377_p3  ;;  %p1279_p8 = scmp.ne.s32.totalorder %s190_s26, %s1278_s27 }
   0x9   : > { %p1287_p12 = scmp.lt.s32.totalorder %s1278_s27, %s1278_s27 }
   0xa   : > { %p1233_p6 = pnand %p1381_p4, %p1232_p5 }
   0xb   : > { %p1288_p13 = por %p1287_p12, %p1286_p11 }
   0xc   : > { %p1269_p7 = pneg %p1233_p6 }
   0xe   : > { %p1281_p9 = pnand %p1279_p8, %p1269_p7 }
  0x10   : > { %p1282_p10 = pneg %p1281_p9 }
  0x12   : > { %p1289_p0 = pnand %p1288_p13, %p1282_p10 }
  0x14   : > { %1292 = shalt.err (!%p1289_p0)
}
  0x15   : > { %s1322_s28 = smov 128   ;;  %s1323_s29 = smov 8  }
  0x16   : > { %1235 = dma.hbm_to_vmem [thread:$0]  (!%p1233_p6), %s1534_s3, 6144, %s190_s26, [#allocation4], %s1322_s28, %s1322_s28, %s1323_s29  }
  0x17   : > { %216 = sbr.rel (%p1377_p3) target bundleno = 630 (0x276), region = 40 }
  0x1c   : > { %1306 = dma.done.wait (%p1381_p4), [#allocation4], 6144  }
  0x1d   : > { %1308 = vsyncadd (%p1381_p4), [#allocation4], 4294961152  ;;  %p247_p1 = scmp.lt.s32.totalorder %s1311_s18, 1  ;;  %v1324_v0 = vmov 0.0   ;;  %vm1325_vm0 = vmmov 0   ;;  %vm273_vm1 = vcmask 64512   ;;  %v565_v54 = vlaneseq }
  0x1e   : > { %1089 = vmatprep.subr.mxu0 %v1324_v0  ;;  %1091 = vmatprep.mubr.msk.f32.mxu0 %vm1325_vm0, %v1324_v0  ;;  %v1007_v1 = vld [vmem:[%s1532_s1 + $0x8] sm:$0xff]  ;;  %v265_v3 = vld [vmem:[%s1532_s1] sm:$0xff]  ;;  %v1017_v7 = vld [vmem:[%s1532_s1 + $0x10] sm:$0xff] }
  0x1f   : > { %s1544_s18 = smov (!%p247_p1, %s1311_s18), 1  ;;  %1122 = vmatprep.subr.mxu1 %v1324_v0  ;;  %1154 = vmatprep.mubr.msk.f32.mxu1 %vm1325_vm0, %v1324_v0  ;;  %v623_v13 = vld [vmem:[#allocation3 + $0xf8] sm:$0xff]  ;;  %v622_v15 = vld [vmem:[#allocation3 + $0xf0] sm:$0xff]  ;;  %v621_v17 = vld [vmem:[#allocation3 + $0xe8] sm:$0xff]  ;;  %v566_v57 = vshrl.u32 %v565_v54, 7 }
  0x20   : > { %s1227_s7 = smul.u32 24, %s1544_s18  ;;  %1090 = vmatpush3.msra.mxu0 %v1007_v1  ;;  %1123 = vmatpush3.msra.mxu1 %v623_v13  ;;  %v604_v14 = vld [vmem:[#allocation3 + $0x78] sm:$0xff]  ;;  %v603_v16 = vld [vmem:[#allocation3 + $0x70] sm:$0xff]  ;;  %v602_v18 = vld [vmem:[#allocation3 + $0x68] sm:$0xff]  ;;  %s1025_s25 = sshll.u32 %s1544_s18, 4 }
  0x21   : > { %1100 = vmatprep.subr.mxu0 %v1324_v0  ;;  %1124 = vmatprep.subr.mxu1 %v1324_v0  ;;  %v620_v19 = vld [vmem:[#allocation3 + $0xe0] sm:$0xff]  ;;  %v619_v21 = vld [vmem:[#allocation3 + $0xd8] sm:$0xff]  ;;  %v618_v23 = vld [vmem:[#allocation3 + $0xd0] sm:$0xff]  ;;  %v570_v62 = vadd.s32 4294967295, %v566_v57  ;;  %s259_s28 = scalar_lea.vmem %s1536_s5, %s1025_s25 }
  0x22   : > { %s1412_s10 = scalar_lea.vmem %s1531_s0, %s1227_s7  ;;  %1125 = vmatpush3.msra.mxu1 %v622_v15  ;;  %v601_v20 = vld [vmem:[#allocation3 + $0x60] sm:$0xff]  ;;  %v600_v22 = vld [vmem:[#allocation3 + $0x58] sm:$0xff]  ;;  %v599_v24 = vld [vmem:[#allocation3 + $0x50] sm:$0xff] }
  0x23   : > { %v1004_v2 = vld [vmem:[%s1412_s10 + $0x1] sm:$0xff]  ;;  %v1005_v4 = vld [vmem:[%s1412_s10 + $0x9] sm:$0xff]  ;;  %v1006_v5 = vld [vmem:[%s1412_s10 + $0x11] sm:$0x1]  ;;  %1126 = vmatprep.subr.mxu1 %v1324_v0  ;;  %vm573_vm2 = vcmp.ge.s32.totalorder %v570_v62, 0 }
  0x24   : > { %1092 = vmatmul.mubr.msk.f32.vlgmr.msra.gmra.mxu0 %vm273_vm1, %v1004_v2  ;;  %v262_v6 = vld [vmem:[%s1412_s10] sm:$0xff]  ;;  %v263_v8 = vld [vmem:[%s1412_s10 + $0x8] sm:$0xff]  ;;  %v264_v9 = vld [vmem:[%s1412_s10 + $0x10] sm:$0x1]  ;;  %1127 = vmatpush3.msra.mxu1 %v621_v17 }
  0x25   : > { %1101 = vmatpush3.msra.mxu0 %v265_v3  ;;  %1094 = vmatprep.mubr.msk.f32.mxu0 %vm1325_vm0, %v1324_v0  ;;  %v1014_v10 = vld [vmem:[%s1412_s10 + $0x2] sm:$0xff]  ;;  %v1015_v11 = vld [vmem:[%s1412_s10 + $0xa] sm:$0xff]  ;;  %v1016_v12 = vld [vmem:[%s1412_s10 + $0x12] sm:$0x1] }
  0x26   : > { %1111 = vmatprep.subr.mxu0 %v1324_v0  ;;  %1128 = vmatprep.subr.mxu1 %v1324_v0  ;;  %v617_v25 = vld [vmem:[#allocation3 + $0xc8] sm:$0xff]  ;;  %v616_v27 = vld [vmem:[#allocation3 + $0xc0] sm:$0xff]  ;;  %v615_v29 = vld [vmem:[#allocation3 + $0xb8] sm:$0xff] }
  0x27   : > { %1129 = vmatpush3.msra.mxu1 %v620_v19  ;;  %v598_v26 = vld [vmem:[#allocation3 + $0x48] sm:$0xff]  ;;  %v597_v28 = vld [vmem:[#allocation3 + $0x40] sm:$0xff]  ;;  %v596_v30 = vld [vmem:[#allocation3 + $0x38] sm:$0xff] }
  0x28   : > { %1095 = vmatmul.mubr.msk.f32.gmra.mxu0 %vm273_vm1, %v1005_v4  ;;  %1130 = vmatprep.subr.mxu1 %v1324_v0  ;;  %v614_v31 = vld [vmem:[#allocation3 + $0xb0] sm:$0xff]  ;;  %v613_v33 = vld [vmem:[#allocation3 + $0xa8] sm:$0xff]  ;;  %v612_v35 = vld [vmem:[#allocation3 + $0xa0] sm:$0xff] }
  0x29   : > { %1097 = vmatprep.mubr.msk.f32.mxu0 %vm1325_vm0, %v1324_v0  ;;  %1131 = vmatpush3.msra.mxu1 %v619_v21  ;;  %v595_v32 = vld [vmem:[#allocation3 + $0x30] sm:$0xff]  ;;  %v594_v34 = vld [vmem:[#allocation3 + $0x28] sm:$0xff]  ;;  %v593_v36 = vld [vmem:[#allocation3 + $0x20] sm:$0xff] }
  0x2a   : > { %1132 = vmatprep.subr.mxu1 %v1324_v0  ;;  %v611_v37 = vld [vmem:[#allocation3 + $0x98] sm:$0xff]  ;;  %v610_v39 = vld [vmem:[#allocation3 + $0x90] sm:$0xff]  ;;  %v609_v41 = vld [vmem:[#allocation3 + $0x88] sm:$0xff] }
  0x2b   : > { %1133 = vmatpush3.msra.mxu1 %v618_v23  ;;  %v592_v38 = vld [vmem:[#allocation3 + $0x18] sm:$0xff]  ;;  %v591_v40 = vld [vmem:[#allocation3 + $0x10] sm:$0xff]  ;;  %v590_v42 = vld [vmem:[#allocation3 + $0x8] sm:$0xff] }
  0x2c   : > { %1098 = vmatmul.mubr.msk.f32.gmra.mxu0 %vm273_vm1, %v1006_v5  ;;  %1134 = vmatprep.subr.mxu1 %v1324_v0  ;;  %v608_v43 = vld [vmem:[#allocation3 + $0x80] sm:$0xff]  ;;  %v1021_v61 = vld [vmem:[%s1533_s2] ss:$0 sm:$0xff]  ;;  %v568_v5 = vadd.s32 16, %v566_v57  ;;  %v781_v23 = vld [vmem:[#allocation3 + $0x170] sm:$0xff] }
  0x2d   : > { %1102 = vmatprep.mubr.msk.f32.mxu0 %vm1325_vm0, %v1324_v0  ;;  %1135 = vmatpush3.msra.mxu1 %v617_v25  ;;  %v589_v44 = vld [vmem:[#allocation3] sm:$0xff] }
  0x2e   : > { %1136 = vmatprep.subr.mxu1 %v1324_v0  ;;  %v572_v13 = vadd.s32 4294967295, %v568_v5  ;;  %v779_v25 = vld [vmem:[#allocation3 + $0x160] sm:$0xff] }
  0x2f   : > { %1137 = vmatpush3.msra.mxu1 %v616_v27  ;;  %v777_v27 = vld [vmem:[#allocation3 + $0x150] sm:$0xff] }
  0x30   : > { %1103 = vmatmul.mubr.msk.f32.vlgmr.msra.gmra.mxu0 %vm273_vm1, %v262_v6  ;;  %1138 = vmatprep.subr.mxu1 %v1324_v0  ;;  %vm578_vm3 = vcmp.lt.s32.totalorder %v572_v13, 16 }
  0x31   : > { %1112 = vmatpush3.msra.mxu0 %v1017_v7  ;;  %1105 = vmatprep.mubr.msk.f32.mxu0 %vm1325_vm0, %v1324_v0 }
  0x32   : > { %1157 = vmatprep.subr.mxu0 %v1324_v0  ;;  %1139 = vmatpush3.msra.mxu1 %v615_v29  ;;  %v775_v29 = vld [vmem:[#allocation3 + $0x140] sm:$0xff] }
  0x33   : > { %1140 = vmatprep.subr.mxu1 %v1324_v0 }
  0x34   : > { %1106 = vmatmul.mubr.msk.f32.gmra.mxu0 %vm273_vm1, %v263_v8  ;;  %1141 = vmatpush3.msra.mxu1 %v614_v31  ;;  %v773_v31 = vld [vmem:[#allocation3 + $0x130] sm:$0xff] }
  0x35   : > { %1108 = vmatprep.mubr.msk.f32.mxu0 %vm1325_vm0, %v1324_v0  ;;  %1142 = vmatprep.subr.mxu1 %v1324_v0 }
  0x36   : > { %1143 = vmatpush3.msra.mxu1 %v613_v33  ;;  %v771_v33 = vld [vmem:[#allocation3 + $0x120] sm:$0xff] }
  0x37   : > { %1144 = vmatprep.subr.mxu1 %v1324_v0 }
  0x38   : > { %1109 = vmatmul.mubr.msk.f32.gmra.mxu0 %vm273_vm1, %v264_v9  ;;  %1145 = vmatpush3.msra.mxu1 %v612_v35  ;;  %v769_v35 = vld [vmem:[#allocation3 + $0x110] sm:$0xff] }
  0x39   : > { %1113 = vmatprep.mubr.msk.f32.mxu0 %vm1325_vm0, %v1324_v0  ;;  %1146 = vmatprep.subr.mxu1 %v1324_v0 }
  0x3a   : > { %1147 = vmatpush3.msra.mxu1 %v611_v37  ;;  %v767_v37 = vld [vmem:[#allocation3 + $0x100] sm:$0xff] }
  0x3b   : > { %1148 = vmatprep.subr.mxu1 %v1324_v0 }
  0x3c   : > { %1114 = vmatmul.mubr.msk.f32.vlgmr.msra.gmra.mxu0 %vm273_vm1, %v1014_v10  ;;  %1149 = vmatpush3.msra.mxu1 %v610_v39 }
  0x3d   : > { %1116 = vmatprep.mubr.msk.f32.mxu0 %vm1325_vm0, %v1324_v0  ;;  %1158 = vmatpush3.msra.mxu0 %v604_v14 }
  0x3e   : > { %1159 = vmatprep.subr.mxu0 %v1324_v0  ;;  %1150 = vmatprep.subr.mxu1 %v1324_v0 }
  0x3f   : > { %1160 = vmatpush3.msra.mxu0 %v603_v16  ;;  %1151 = vmatpush3.msra.mxu1 %v609_v41 }
  0x40   : > { %1117 = vmatmul.mubr.msk.f32.gmra.mxu0 %vm273_vm1, %v1015_v11  ;;  %1161 = vmatprep.subr.mxu0 %v1324_v0 }
  0x41   : > { %1119 = vmatprep.mubr.msk.f32.mxu0 %vm1325_vm0, %v1324_v0  ;;  %1162 = vmatpush3.msra.mxu0 %v602_v18 }
  0x42   : > { %1163 = vmatprep.subr.mxu0 %v1324_v0  ;;  %1152 = vmatprep.subr.mxu1 %v1324_v0 }
  0x43   : > { %1164 = vmatpush3.msra.mxu0 %v601_v20  ;;  %1153 = vmatpush3.msra.mxu1 %v608_v43  ;;  %v782_v20 = vld [vmem:[#allocation3 + $0x178] sm:$0xff] }
  0x44   : > { %1120 = vmatmul.mubr.msk.f32.gmra.mxu0 %vm273_vm1, %v1016_v12  ;;  %1165 = vmatprep.subr.mxu0 %v1324_v0 }
  0x45   : > { %1189 = vmatprep.mubr.msk.f32.mxu0 %vm1325_vm0, %v1324_v0  ;;  %1166 = vmatpush3.msra.mxu0 %v600_v22 }
  0x46   : > { %1167 = vmatprep.subr.mxu0 %v1324_v0  ;;  %1192 = vmatprep.subr.mxu1 %v1324_v0 }
  0x47   : > { %1168 = vmatpush3.msra.mxu0 %v599_v24  ;;  %v780_v24 = vld [vmem:[#allocation3 + $0x168] sm:$0xff] }
  0x48   : > { %1169 = vmatprep.subr.mxu0 %v1324_v0 }
  0x49   : > { %1170 = vmatpush3.msra.mxu0 %v598_v26  ;;  %v778_v26 = vld [vmem:[#allocation3 + $0x158] sm:$0xff] }
  0x4a   : > { %1171 = vmatprep.subr.mxu0 %v1324_v0 }
  0x4b   : > { %1172 = vmatpush3.msra.mxu0 %v597_v28  ;;  %v776_v28 = vld [vmem:[#allocation3 + $0x148] sm:$0xff] }
  0x4c   : > { %1173 = vmatprep.subr.mxu0 %v1324_v0 }
  0x4d   : > { %1174 = vmatpush3.msra.mxu0 %v596_v30  ;;  %v774_v30 = vld [vmem:[#allocation3 + $0x138] sm:$0xff] }
  0x4e   : > { %1175 = vmatprep.subr.mxu0 %v1324_v0 }
  0x4f   : > { %1176 = vmatpush3.msra.mxu0 %v595_v32  ;;  %v772_v32 = vld [vmem:[#allocation3 + $0x128] sm:$0xff] }
  0x50   : > { %1177 = vmatprep.subr.mxu0 %v1324_v0 }
  0x51   : > { %1178 = vmatpush3.msra.mxu0 %v594_v34  ;;  %v770_v34 = vld [vmem:[#allocation3 + $0x118] sm:$0xff] }
  0x52   : > { %1179 = vmatprep.subr.mxu0 %v1324_v0 }
  0x53   : > { %1180 = vmatpush3.msra.mxu0 %v593_v36  ;;  %v768_v36 = vld [vmem:[#allocation3 + $0x108] sm:$0xff] }
  0x54   : > { %1181 = vmatprep.subr.mxu0 %v1324_v0 }
  0x55   : > { %1182 = vmatpush3.msra.mxu0 %v592_v38 }
  0x56   : > { %1183 = vmatprep.subr.mxu0 %v1324_v0 }
  0x57   : > { %1184 = vmatpush3.msra.mxu0 %v591_v40 }
  0x58   : > { %1185 = vmatprep.subr.mxu0 %v1324_v0 }
  0x59   : > { %1186 = vmatpush3.msra.mxu0 %v590_v42 }
  0x5a   : > { %1187 = vmatprep.subr.mxu0 %v1324_v0 }
  0x5b   : > { %1188 = vmatpush3.msra.mxu0 %v589_v44 }
  0xe4   : > { %v349_v45 = vpop.f32.mrf.mxu0 }
  0xe6   : > { %v1093_v46 = vpop.f32.mrf.mxu0 }
  0xe8   : > { %v354_v47 = vpop.f32.mrf.mxu0 }
  0xea   : > { %v1096_v48 = vpop.f32.mrf.mxu0 }
  0xec   : > { %v359_v49 = vpop.f32.mrf.mxu0 }
  0xee   : > { %v1099_v50 = vpop.f32.mrf.mxu0 }
  0xf0   : > { %v438_v51 = vpop.f32.mrf.mxu0 }
  0xf1   : > { %v439_v59 = vadd.f32 %v438_v51, %v349_v45  ;;  %v1022_v45 = vld [vmem:[%s1535_s4] ss:$0 sm:$0xff] }
  0xf2   : > { %v1104_v52 = vpop.f32.mrf.mxu0 }
  0xf4   : > { %v443_v53 = vpop.f32.mrf.mxu0 }
  0xf5   : > { %v444_v2 = vadd.f32 %v443_v53, %v354_v47 }
  0xf6   : > { %v1107_v55 = vpop.f32.mrf.mxu0 }
  0xf8   : > { %v448_v56 = vpop.f32.mrf.mxu0 }
  0xf9   : > { %v449_v9 = vadd.f32 %v448_v56, %v359_v49 }
  0xfa   : > { %v1110_v58 = vpop.f32.mrf.mxu0 }
  0xfc   : > { %v534_v60 = vpop.f32.mrf.mxu0 }
  0xfd   : > { %v548_v63 = vadd.f32 %v534_v60, %v439_v59 }
  0xfe   : > { %v1115_v1 = vpop.f32.mrf.mxu0 }
  0xff   : > { %v558_v3 = vadd.f32 %v1021_v61, %v548_v63 }
 0x100   : > { %v539_v4 = vpop.f32.mrf.mxu0 }
 0x101   : > { %v561_v6 = vmax.f32 %v558_v3, 0.0  ;;  %v549_v7 = vadd.f32 %v539_v4, %v444_v2 }
 0x102   : > { %v1118_v8 = vpop.f32.mrf.mxu0 }
 0x103   : > { %v582_v10 = vsel %vm573_vm2, %v561_v6, 0.0  ;;  %v559_v11 = vadd.f32 %v1021_v61, %v549_v7 }
 0x104   : > { %585 = vst [vmem:[#allocation2] sm:$0xff] %v582_v10  ;;  %v544_v12 = vpop.f32.mrf.mxu0 }
 0x105   : > { %v562_v14 = vmax.f32 %v559_v11, 0.0  ;;  %v550_v15 = vadd.f32 %v544_v12, %v449_v9 }
 0x106   : > { %v1121_v16 = vpop.f32.mrf.mxu0 }
 0x107   : > { %586 = vst [vmem:[#allocation2 + $0x8] sm:$0xff] %v562_v14  ;;  %v560_v17 = vadd.f32 %v1021_v61, %v550_v15 }
 0x109   : > { %v563_v18 = vmax.f32 %v560_v17, 0.0 }
 0x10b   : > { %v584_v19 = vsel %vm578_vm3, %v563_v18, 0.0 }
 0x10c   : > { %587 = vst [vmem:[#allocation2 + $0x10] sm:$0x1] %v584_v19 }
 0x10e   : > { %v606_v21 = vld [vmem:[#allocation2 + $0x1] ss:$2 sm:$0xff]  ;;  %v588_v22 = vld [vmem:[#allocation2] ss:$2 sm:$0xff] }
 0x10f   : > { %1155 = vmatmul.mubr.f32.vlgmr.msra.gmra.mxu1 %v606_v21  ;;  %1190 = vmatmul.mubr.f32.vlgmr.msra.gmra.mxu0 %v588_v22 }
 0x110   : > { %1193 = vmatpush3.msra.mxu1 %v782_v20  ;;  %1224 = vmatprep.mubr.msk.f32.mxu1 %vm1325_vm0, %v1324_v0 }
 0x111   : > { %1194 = vmatprep.subr.mxu1 %v1324_v0 }
 0x112   : > { %1195 = vmatpush3.msra.mxu1 %v781_v23 }
 0x113   : > { %1196 = vmatprep.subr.mxu1 %v1324_v0  ;;  %v765_v38 = vld [vmem:[#allocation2 + $0x2] ss:$2 sm:$0xff] }
 0x114   : > { %1197 = vmatpush3.msra.mxu1 %v780_v24 }
 0x115   : > { %1198 = vmatprep.subr.mxu1 %v1324_v0 }
 0x116   : > { %1199 = vmatpush3.msra.mxu1 %v779_v25 }
 0x117   : > { %1200 = vmatprep.subr.mxu1 %v1324_v0 }
 0x118   : > { %1201 = vmatpush3.msra.mxu1 %v778_v26 }
 0x119   : > { %1202 = vmatprep.subr.mxu1 %v1324_v0 }
 0x11a   : > { %1203 = vmatpush3.msra.mxu1 %v777_v27 }
 0x11b   : > { %1204 = vmatprep.subr.mxu1 %v1324_v0 }
 0x11c   : > { %1205 = vmatpush3.msra.mxu1 %v776_v28 }
 0x11d   : > { %1206 = vmatprep.subr.mxu1 %v1324_v0 }
 0x11e   : > { %1207 = vmatpush3.msra.mxu1 %v775_v29 }
 0x11f   : > { %1208 = vmatprep.subr.mxu1 %v1324_v0 }
 0x120   : > { %1209 = vmatpush3.msra.mxu1 %v774_v30 }
 0x121   : > { %1210 = vmatprep.subr.mxu1 %v1324_v0 }
 0x122   : > { %1211 = vmatpush3.msra.mxu1 %v773_v31 }
 0x123   : > { %1212 = vmatprep.subr.mxu1 %v1324_v0 }
 0x124   : > { %1213 = vmatpush3.msra.mxu1 %v772_v32 }
 0x125   : > { %1214 = vmatprep.subr.mxu1 %v1324_v0 }
 0x126   : > { %1215 = vmatpush3.msra.mxu1 %v771_v33 }
 0x127   : > { %1216 = vmatprep.subr.mxu1 %v1324_v0 }
 0x128   : > { %1217 = vmatpush3.msra.mxu1 %v770_v34 }
 0x129   : > { %1218 = vmatprep.subr.mxu1 %v1324_v0 }
 0x12a   : > { %1219 = vmatpush3.msra.mxu1 %v769_v35 }
 0x12b   : > { %1220 = vmatprep.subr.mxu1 %v1324_v0 }
 0x12c   : > { %1221 = vmatpush3.msra.mxu1 %v768_v36 }
 0x12d   : > { %1222 = vmatprep.subr.mxu1 %v1324_v0 }
 0x12e   : > { %1223 = vmatpush3.msra.mxu1 %v767_v37 }
 0x12f   : > { %1225 = vmatmul.mubr.f32.vlgmr.msra.gmra.mxu1 %v765_v38 }
 0x1cf   : > { %v690_v39 = vpop.f32.mrf.mxu1  ;;  %v760_v40 = vpop.f32.mrf.mxu0 }
 0x1d0   : > { %v761_v43 = vadd.f32 %v760_v40, %v690_v39 }
 0x1d1   : > { %v1156_v41 = vpop.f32.mrf.mxu1  ;;  %v1191_v42 = vpop.f32.mrf.mxu0 }
 0x1ef   : > { %v849_v44 = vpop.f32.mrf.mxu1 }
 0x1f0   : > { %v853_v46 = vadd.f32 %v849_v44, %v761_v43 }
 0x1f1   : > { %v1226_v47 = vpop.f32.mrf.mxu1 }
 0x1f2   : > { %v861_v48 = vadd.f32 %v1022_v45, %v853_v46 }
 0x1f4   : > { %862 = vxpose.xlu0.b32.start.end [1/1] (short) (narrow) %v861_v48, 16 }
 0x270   : > { %v878_v0 = vpop.trf.xlu0 }
 0x271   : > { %894 = vst.msk [vmem:[%s259_s28] sm:$0xff] %vm273_vm1, %v878_v0 }
 0x274   : > { %v879_v49 = vpop.trf.xlu0 }
 0x275   : > { %895 = vst.msk [vmem:[%s259_s28 + $0x8] sm:$0xff] %vm273_vm1, %v879_v49 }
 0x276 PF: > { %s16_s20 = sadd.s32 1, %s1319_s20   ;;  %s1539_s18 = smov %s1315_s19 }
 0x277   : > { %p13_p2 = scmp.ge.s32.totalorder %s16_s20, 4   ;;  %s1540_s19 = smov %s1542_s22 }
 0x279   :  { %15 = sbr.rel (!%p13_p2) target bundleno = 2 (0x2), region = 84 }
 0x27e   :  { %923 = vsyncpa [#allocation4], 1 }
 0x27f   :  { %925 = vsyncpa [#allocation4 + $0x1], 1 }

</bundles_post_ra>
